<compile_context>
chip_gen: v6e
topology: v6e:2x2x1
jax: 0.10.0
libtpu: 0.0.40
codegen_flags: <defaults>
</compile_context>

<pallas_src>
import jax
import jax.numpy as jnp
import numpy as np
from jax.experimental import pallas as pl
from jax.experimental.pallas import tpu as pltpu

LANES = 128
SUBLANES = 8
LARGE_LEAF_ELEMS = 32 * 1024      # leaves >= 128 KiB (f32) get their own in-place kernel


def _max_tile_rows():
    """Generation-aware max tile rows for the (rows, 128) f32 EMA tiles."""
    try:
        kind = jax.devices()[0].device_kind.lower()
    except Exception:
        return 2048
    if "v6" in kind or "7" in kind:                       # v6e / v7x: 32 MiB scoped default
        return 8192                                       # 4 MiB/operand -> 24 MiB total
    if "v5" in kind and ("lite" in kind or "v5e" in kind):
        return 4096                                       # v5e: 16 MiB default -> 12 MiB total
    if "v4" in kind or "v5" in kind:                      # v4 / v5p: ample physical VMEM
        return 8192
    return 2048                                           # unknown / older: proven-safe fallback


# ----------------------------- Pallas kernel --------------------------------
def _ema_kernel(decay_ref, shadow_ref, param_ref, out_ref):
    # decay_ref: SMEM (1,) scalar.  shadow/out: (tile_rows, 128) f32 VMEM tiles.
    # param may arrive in its native dtype (f32 or bf16); cast in-vreg (free).
    one_minus_decay = 1.0 - decay_ref[0]
    s = shadow_ref[...]
    p = param_ref[...].astype(jnp.float32)
    # shadow.sub_(one_minus_decay * (shadow - param))
    out_ref[...] = s - one_minus_decay * (s - p)


def _ema_update_2d(decay_arr, shadow2d, param2d, tile_rows):
    """In-place EMA on a (R, 128) slab; shadow2d is aliased to the output."""
    R, C = shadow2d.shape
    assert C == LANES
    grid = (pl.cdiv(R, tile_rows),)          # clamped last block, no dead padding

    cp_kwargs = {"dimension_semantics": ("parallel",)}   # megacore-sharded on v7x
    need = 6 * tile_rows * LANES * 4         # 3 operands x 2 pipeline buffers, f32
    if need > (12 << 20):
        cp_kwargs["vmem_limit_bytes"] = int(need + (4 << 20))

    return pl.pallas_call(
        _ema_kernel,
        out_shape=jax.ShapeDtypeStruct((R, C), jnp.float32),
        grid_spec=pl.GridSpec(
            grid=grid,
            in_specs=[
                pl.BlockSpec(memory_space=pltpu.SMEM),               # decay scalar
                pl.BlockSpec((tile_rows, LANES), lambda i: (i, 0)),  # shadow tile
                pl.BlockSpec((tile_rows, LANES), lambda i: (i, 0)),  # param tile
            ],
            out_specs=pl.BlockSpec((tile_rows, LANES), lambda i: (i, 0)),
        ),
        # Operand 0 is the SMEM decay scalar, so the shadow input is operand 1.
        input_output_aliases={1: 0},
        compiler_params=pltpu.CompilerParams(**cp_kwargs),
    )(decay_arr, shadow2d, param2d)


def _slab_rows(n_elems):
    rows = -(-n_elems // LANES)                 # ceil to full 128-lane rows
    rows = -(-rows // SUBLANES) * SUBLANES      # multiple of 8 sublanes (no tile rounding)
    return max(rows, SUBLANES)


class LitEmaPallas:
    """JAX/Pallas port of LitEma.forward (the EMA update hot path)."""

    SLAB = "__small_param_slab__"

    def __init__(self, model_params, decay=0.9999, use_num_updates=True):
        if decay < 0.0 or decay > 1.0:
            raise ValueError("Decay must be between 0 and 1")
        self.decay = float(decay)
        self.use_num_updates = bool(use_num_updates)
        self.num_updates = jnp.asarray(0 if use_num_updates else -1, jnp.int32)

        self._keys = sorted(model_params)
        self._shapes = {k: tuple(model_params[k].shape) for k in self._keys}
        self._sizes = {k: int(np.prod(self._shapes[k])) for k in self._keys}
        self._max_rows = _max_tile_rows()

        # Big, 128-divisible leaves get their own per-leaf in-place kernel
        # (zero-copy reshape of the incoming param).  Everything else is tiny
        # and goes into one small packed slab.
        self._large_keys = [k for k in self._keys
                            if self._sizes[k] >= LARGE_LEAF_ELEMS
                            and self._sizes[k] % LANES == 0]
        self._small_keys = [k for k in self._keys if k not in self._large_keys]
        self._n_small = int(sum(self._sizes[k] for k in self._small_keys))
        self._rows_small = _slab_rows(self._n_small) if self._small_keys else 0

        self._tiles = {}
        for k in self._large_keys:
            R = self._sizes[k] // LANES
            self._tiles[k] = R if R <= self._max_rows else self._max_rows
        self._slab_tile = 0
        if self._small_keys:
            self._slab_tile = (self._rows_small if self._rows_small <= self._max_rows
                               else self._max_rows)

        # ---- initial shadow state, stored permanently in kernel layout ----
        shadow = {}
        for k in self._large_keys:
            shadow[k] = jnp.asarray(model_params[k], jnp.float32).reshape(
                self._sizes[k] // LANES, LANES)
        if self._small_keys:
            shadow[self.SLAB] = self._pack_small(model_params)
        self.shadow = shadow

        decay0, use_nu = self.decay, self.use_num_updates
        large_keys, small_keys = self._large_keys, self._small_keys
        sizes, tiles = self._sizes, self._tiles
        rows_small, slab_tile, n_small = self._rows_small, self._slab_tile, self._n_small
        SLAB = self.SLAB

        def _step(num_updates, shadow, params):
            # Decay schedule entirely on device (no host sync per step).
            if use_nu:   # static Python bool -> matches PyTorch's num_updates>=0 path
                num_updates = num_updates + 1
                nu_f = num_updates.astype(jnp.float32)
                decay = jnp.minimum(jnp.float32(decay0), (1.0 + nu_f) / (10.0 + nu_f))
            else:
                decay = jnp.float32(decay0)
            decay_arr = jnp.reshape(decay, (1,)).astype(jnp.float32)

            new_shadow = {}
            # Large leaves: zero-copy (R,128) view of the native param, one
            # in-place pallas_call each.  No concat / pad pass over the model.
            for k in large_keys:
                p2d = jnp.reshape(params[k], (sizes[k] // LANES, LANES))
                new_shadow[k] = _ema_update_2d(decay_arr, shadow[k], p2d, tiles[k])

            # Small leaves: pack into one tiny slab (negligible bytes).
            if small_keys:
                flat = jnp.concatenate(
                    [jnp.ravel(params[k]).astype(jnp.float32) for k in small_keys], 0)
                p2d = jnp.pad(flat, (0, rows_small * LANES - n_small)).reshape(
                    rows_small, LANES)
                new_shadow[SLAB] = _ema_update_2d(decay_arr, shadow[SLAB], p2d, slab_tile)
            return num_updates, new_shadow

        # Donate the shadow pytree so the aliased pallas outputs reuse its buffers.
        self._step = jax.jit(_step, donate_argnums=(1,))

    # ---- host-side glue (not the hot path) ----
    def _pack_small(self, params):
        flat = jnp.concatenate(
            [jnp.ravel(jnp.asarray(params[k], jnp.float32)) for k in self._small_keys], 0)
        pad = self._rows_small * LANES - self._n_small
        return jnp.pad(flat, (0, pad)).reshape(self._rows_small, LANES)

    def forward(self, model_params):
        params = {k: jnp.asarray(model_params[k]) for k in self._keys}
        self.num_updates, self.shadow = self._step(self.num_updates, self.shadow, params)
        return None  # matches PyTorch: forward mutates the shadow buffers

    def copy_to(self):
        """Return the EMA params as a dict (equivalent of LitEma.copy_to)."""
        out = {}
        for k in self._large_keys:
            out[k] = self.shadow[k].reshape(self._shapes[k])
        if self._small_keys:
            flat = self.shadow[self.SLAB].reshape(-1)[: self._n_small]
            off = 0
            for k in self._small_keys:
                sz = self._sizes[k]
                out[k] = flat[off:off + sz].reshape(self._shapes[k])
                off += sz
        return out

    # TODO(synk): LitEma.store / LitEma.restore are host-side parameter
    # bookkeeping (clone/copy of python-held params); no kernel is needed.


# --------------------------------- main --------------------------------------
if __name__ == "__main__":
    key = jax.random.PRNGKey(0)
    ks = jax.random.split(key, 6)

    # Deterministic synthetic "model" parameters.  attn.weight (128x256 = 32768
    # elems) exercises the per-leaf in-place kernel path; the rest pack into the
    # small-leaf slab.
    init_params = {
        "conv.weight": jax.random.normal(ks[0], (4, 4, 3, 3), jnp.float32),
        "conv.bias": jax.random.normal(ks[1], (4,), jnp.float32),
        "fc.weight": jax.random.normal(ks[2], (32, 64), jnp.float32),
        "fc.bias": jax.random.normal(ks[3], (64,), jnp.float32),
        "attn.weight": jax.random.normal(ks[4], (128, 256), jnp.float32),
    }
    # "Trained" parameters after one optimization step (what forward() consumes).
    updated_params = {
        k: v + 0.05 * jax.random.normal(jax.random.fold_in(ks[5], i), v.shape, jnp.float32)
        for i, (k, v) in enumerate(sorted(init_params.items()))
    }

    ema = LitEmaPallas(init_params, decay=0.9999, use_num_updates=True)

    # ---- step 1 ----
    ema.forward(updated_params)
    shadow1 = ema.copy_to()
    jax.block_until_ready(shadow1)

    nu1 = 1
    d1 = min(0.9999, (1.0 + nu1) / (10.0 + nu1))
    omd1 = 1.0 - d1
    ok = True
    ref1 = {}
    for k in init_params:
        ref1[k] = init_params[k] - omd1 * (init_params[k] - updated_params[k])
        ok &= bool(jnp.allclose(shadow1[k], ref1[k], atol=1e-5, rtol=1e-5))
        ok &= shadow1[k].shape == init_params[k].shape

    # ---- step 2 (exercises num_updates-dependent decay and buffer donation) ----
    ema.forward(updated_params)
    shadow2 = ema.copy_to()
    jax.block_until_ready(shadow2)

    nu2 = 2
    d2 = min(0.9999, (1.0 + nu2) / (10.0 + nu2))
    omd2 = 1.0 - d2
    for k in init_params:
        ref2 = ref1[k] - omd2 * (ref1[k] - updated_params[k])
        ok &= bool(jnp.allclose(shadow2[k], ref2, atol=1e-5, rtol=1e-5))

    if ok:
        print("KERNEL_OK")
    else:
        raise SystemExit("mismatch vs reference")
</pallas_src>

<mosaic_0001>
module attributes {stable_mosaic.version = 11 : i64} {
  func.func @_ema_kernel(%arg0: i32, %arg1: memref<1xf32, #tpu.memory_space<smem>>, %arg2: memref<256x128xf32, #tpu.memory_space<vmem>>, %arg3: memref<256x128xf32, #tpu.memory_space<vmem>>, %arg4: memref<256x128xf32, #tpu.memory_space<vmem>>) attributes {dimension_semantics = [#tpu.dimension_semantics<parallel>], iteration_bounds = array<i64: 1>, scalar_prefetch = 0 : i64, scratch_operands = 0 : i64, tpu.core_type = #tpu.core_type<tc>, window_params = [{transform_indices = @transform_0, window_bounds = array<i64: 1>}, {transform_indices = @transform_1, window_bounds = array<i64: 256, 128>}, {transform_indices = @transform_2, window_bounds = array<i64: 256, 128>}, {transform_indices = @transform_3, window_bounds = array<i64: 256, 128>}]} {
    %c0 = arith.constant 0 : index
    %0 = memref.load %arg1[%c0] : memref<1xf32, #tpu.memory_space<smem>>
    %cst = arith.constant 1.000000e+00 : f32
    %1 = arith.subf %cst, %0 : f32
    %c0_0 = arith.constant 0 : index
    %c0_1 = arith.constant 0 : index
    %2 = vector.load %arg2[%c0_0, %c0_1] : memref<256x128xf32, #tpu.memory_space<vmem>>, vector<256x128xf32>
    %c0_2 = arith.constant 0 : index
    %c0_3 = arith.constant 0 : index
    %3 = vector.load %arg3[%c0_2, %c0_3] : memref<256x128xf32, #tpu.memory_space<vmem>>, vector<256x128xf32>
    %4 = arith.subf %2, %3 : vector<256x128xf32>
    %5 = vector.broadcast %1 : f32 to vector<256x128xf32>
    %6 = arith.mulf %5, %4 : vector<256x128xf32>
    %7 = arith.subf %2, %6 : vector<256x128xf32>
    %c0_4 = arith.constant 0 : index
    %c0_5 = arith.constant 0 : index
    %8 = vector.load %arg4[%c0_4, %c0_5] : memref<256x128xf32, #tpu.memory_space<vmem>>, vector<256x128xf32>
    tpu.vector_store %arg4[%c0_4, %c0_5], %7 {strides = array<i32>} : memref<256x128xf32, #tpu.memory_space<vmem>>, vector<256x128xf32>,
    return
  }
  func.func @transform_0(%arg0: i32) -> i32 {
    %c0_i32 = arith.constant 0 : i32
    %c0_i32_0 = arith.constant 0 : i32
    return %c0_i32 : i32
  }
  func.func @transform_1(%arg0: i32) -> (i32, i32) {
    %c0_i32 = arith.constant 0 : i32
    %c0_i32_0 = arith.constant 0 : i32
    return %arg0, %c0_i32 : i32, i32
  }
  func.func @transform_2(%arg0: i32) -> (i32, i32) {
    %c0_i32 = arith.constant 0 : i32
    %c0_i32_0 = arith.constant 0 : i32
    return %arg0, %c0_i32 : i32, i32
  }
  func.func @transform_3(%arg0: i32) -> (i32, i32) {
    %c0_i32 = arith.constant 0 : i32
    %c0_i32_0 = arith.constant 0 : i32
    return %arg0, %c0_i32 : i32, i32
  }
}

module attributes {stable_mosaic.version = 11 : i64} {
  func.func @_ema_kernel(%arg0: i32, %arg1: memref<1xf32, #tpu.memory_space<smem>>, %arg2: memref<24x128xf32, #tpu.memory_space<vmem>>, %arg3: memref<24x128xf32, #tpu.memory_space<vmem>>, %arg4: memref<24x128xf32, #tpu.memory_space<vmem>>) attributes {dimension_semantics = [#tpu.dimension_semantics<parallel>], iteration_bounds = array<i64: 1>, scalar_prefetch = 0 : i64, scratch_operands = 0 : i64, tpu.core_type = #tpu.core_type<tc>, window_params = [{transform_indices = @transform_0, window_bounds = array<i64: 1>}, {transform_indices = @transform_1, window_bounds = array<i64: 24, 128>}, {transform_indices = @transform_2, window_bounds = array<i64: 24, 128>}, {transform_indices = @transform_3, window_bounds = array<i64: 24, 128>}]} {
    %c0 = arith.constant 0 : index
    %0 = memref.load %arg1[%c0] : memref<1xf32, #tpu.memory_space<smem>>
    %cst = arith.constant 1.000000e+00 : f32
    %1 = arith.subf %cst, %0 : f32
    %c0_0 = arith.constant 0 : index
    %c0_1 = arith.constant 0 : index
    %2 = vector.load %arg2[%c0_0, %c0_1] : memref<24x128xf32, #tpu.memory_space<vmem>>, vector<24x128xf32>
    %c0_2 = arith.constant 0 : index
    %c0_3 = arith.constant 0 : index
    %3 = vector.load %arg3[%c0_2, %c0_3] : memref<24x128xf32, #tpu.memory_space<vmem>>, vector<24x128xf32>
    %4 = arith.subf %2, %3 : vector<24x128xf32>
    %5 = vector.broadcast %1 : f32 to vector<24x128xf32>
    %6 = arith.mulf %5, %4 : vector<24x128xf32>
    %7 = arith.subf %2, %6 : vector<24x128xf32>
    %c0_4 = arith.constant 0 : index
    %c0_5 = arith.constant 0 : index
    %8 = vector.load %arg4[%c0_4, %c0_5] : memref<24x128xf32, #tpu.memory_space<vmem>>, vector<24x128xf32>
    tpu.vector_store %arg4[%c0_4, %c0_5], %7 {strides = array<i32>} : memref<24x128xf32, #tpu.memory_space<vmem>>, vector<24x128xf32>,
    return
  }
  func.func @transform_0(%arg0: i32) -> i32 {
    %c0_i32 = arith.constant 0 : i32
    %c0_i32_0 = arith.constant 0 : i32
    return %c0_i32 : i32
  }
  func.func @transform_1(%arg0: i32) -> (i32, i32) {
    %c0_i32 = arith.constant 0 : i32
    %c0_i32_0 = arith.constant 0 : i32
    return %arg0, %c0_i32 : i32, i32
  }
  func.func @transform_2(%arg0: i32) -> (i32, i32) {
    %c0_i32 = arith.constant 0 : i32
    %c0_i32_0 = arith.constant 0 : i32
    return %arg0, %c0_i32 : i32, i32
  }
  func.func @transform_3(%arg0: i32) -> (i32, i32) {
    %c0_i32 = arith.constant 0 : i32
    %c0_i32_0 = arith.constant 0 : i32
    return %arg0, %c0_i32 : i32, i32
  }
}

</mosaic_0001>

<bundles_post_ra>
// kernel: _step.3
= control target key start
LH: loop header
LB: loop body
LE: loop exit
PB: predicated region body
PF: predicated region fallthrough
CT: control target
= control target key end

     0   :  { %s90_s0 = inlined_call_operand.<no memory space> [shape: f32[1], index: 0, kind: input, shape index: {}]   ;;  %s91_s1 = inlined_call_operand.vmem [shape: f32[24,128], index: 1, kind: input, shape index: {}, may-alias: {1,3}]   ;;  %s92_s2 = inlined_call_operand.vmem [shape: f32[24,128], index: 2, kind: input, shape index: {}]   ;;  %s93_s3 = inlined_call_operand.vmem [shape: f32[24,128], index: 3, kind: output, shape index: {}, may-alias: {1,3}]  }
   0x1   :  { %s16_s14 = ssub.f32 1.0, %s90_s0  ;;  %v17_v0 = vld [vmem:[%s91_s1] sm:$0xff]  ;;  %v18_v2 = vld [vmem:[%s91_s1 + $0x8] sm:$0xff]  ;;  %v19_v5 = vld [vmem:[%s91_s1 + $0x10] sm:$0xff] }
   0x2   :  { %v20_v1 = vld [vmem:[%s92_s2] sm:$0xff]  ;;  %v21_v4 = vld [vmem:[%s92_s2 + $0x8] sm:$0xff]  ;;  %v22_v6 = vld [vmem:[%s92_s2 + $0x10] sm:$0xff] }
   0x3   :  { %v23_v3 = vsub.f32 %v17_v0, %v20_v1  ;;  %v26_v7 = vstv %s16_s14  ;;  %v24_v8 = vsub.f32 %v18_v2, %v21_v4  ;;  %v25_v9 = vsub.f32 %v19_v5, %v22_v6 }
   0x5   :  { %v27_v10 = vmul.f32 %v26_v7, %v23_v3  ;;  %v28_v11 = vmul.f32 %v26_v7, %v24_v8  ;;  %v29_v12 = vmul.f32 %v26_v7, %v25_v9 }
   0x7   :  { %v30_v13 = vsub.f32 %v17_v0, %v27_v10  ;;  %v31_v14 = vsub.f32 %v18_v2, %v28_v11  ;;  %v32_v15 = vsub.f32 %v19_v5, %v29_v12 }
   0x9   :  { %33 = vst [vmem:[%s93_s3] sm:$0xff] %v30_v13  ;;  %34 = vst [vmem:[%s93_s3 + $0x8] sm:$0xff] %v31_v14 }
   0xa   :  { %35 = vst [vmem:[%s93_s3 + $0x10] sm:$0xff] %v32_v15 }

// kernel: _step.2
= control target key start
LH: loop header
LB: loop body
LE: loop exit
PB: predicated region body
PF: predicated region fallthrough
CT: control target
= control target key end

     0   :  { %s595_s0 = inlined_call_operand.<no memory space> [shape: f32[1], index: 0, kind: input, shape index: {}]   ;;  %s596_s1 = inlined_call_operand.vmem [shape: f32[256,128], index: 1, kind: input, shape index: {}, may-alias: {1,3}]   ;;  %s597_s2 = inlined_call_operand.vmem [shape: f32[256,128], index: 2, kind: input, shape index: {}]   ;;  %s598_s3 = inlined_call_operand.vmem [shape: f32[256,128], index: 3, kind: output, shape index: {}, may-alias: {1,3}]  }
   0x1   :  { %s16_s14 = ssub.f32 1.0, %s595_s0  ;;  %v17_v0 = vld [vmem:[%s596_s1] sm:$0xff]  ;;  %v18_v2 = vld [vmem:[%s596_s1 + $0x8] sm:$0xff]  ;;  %v19_v5 = vld [vmem:[%s596_s1 + $0x10] sm:$0xff] }
   0x2   :  { %v49_v1 = vld [vmem:[%s597_s2] sm:$0xff]  ;;  %v50_v4 = vld [vmem:[%s597_s2 + $0x8] sm:$0xff]  ;;  %v51_v6 = vld [vmem:[%s597_s2 + $0x10] sm:$0xff] }
   0x3   :  { %v81_v3 = vsub.f32 %v17_v0, %v49_v1  ;;  %v255_v7 = vstv %s16_s14  ;;  %v82_v8 = vsub.f32 %v18_v2, %v50_v4  ;;  %v83_v9 = vsub.f32 %v19_v5, %v51_v6  ;;  %v20_v10 = vld [vmem:[%s596_s1 + $0x18] sm:$0xff]  ;;  %v21_v12 = vld [vmem:[%s596_s1 + $0x20] sm:$0xff]  ;;  %v22_v16 = vld [vmem:[%s596_s1 + $0x28] sm:$0xff] }
   0x4   :  { %v52_v11 = vld [vmem:[%s597_s2 + $0x18] sm:$0xff]  ;;  %v53_v15 = vld [vmem:[%s597_s2 + $0x20] sm:$0xff]  ;;  %v54_v17 = vld [vmem:[%s597_s2 + $0x28] sm:$0xff] }
   0x5   :  { %v114_v13 = vmul.f32 %v255_v7, %v81_v3  ;;  %v84_v14 = vsub.f32 %v20_v10, %v52_v11  ;;  %v115_v18 = vmul.f32 %v255_v7, %v82_v8  ;;  %v116_v19 = vmul.f32 %v255_v7, %v83_v9  ;;  %v23_v22 = vld [vmem:[%s596_s1 + $0x30] sm:$0xff]  ;;  %v287_v24 = vld [vmem:[%s596_s1 + $0x38] sm:$0xff]  ;;  %v25_v29 = vld [vmem:[%s596_s1 + $0x40] sm:$0xff] }
   0x6   :  { %v85_v20 = vsub.f32 %v21_v12, %v53_v15  ;;  %v86_v21 = vsub.f32 %v22_v16, %v54_v17  ;;  %v55_v23 = vld [vmem:[%s597_s2 + $0x30] sm:$0xff]  ;;  %v56_v28 = vld [vmem:[%s597_s2 + $0x38] sm:$0xff]  ;;  %v57_v30 = vld [vmem:[%s597_s2 + $0x40] sm:$0xff] }
   0x7   :  { %v146_v25 = vsub.f32 %v17_v0, %v114_v13  ;;  %v117_v26 = vmul.f32 %v255_v7, %v84_v14  ;;  %v87_v27 = vsub.f32 %v23_v22, %v55_v23  ;;  %v147_v31 = vsub.f32 %v18_v2, %v115_v18  ;;  %v26_v35 = vld [vmem:[%s596_s1 + $0x48] sm:$0xff]  ;;  %v27_v37 = vld [vmem:[%s596_s1 + $0x50] sm:$0xff]  ;;  %v60_v44 = vld [vmem:[%s597_s2 + $0x58] sm:$0xff] }
   0x8   :  { %v148_v32 = vsub.f32 %v19_v5, %v116_v19  ;;  %v118_v33 = vmul.f32 %v255_v7, %v85_v20  ;;  %v119_v34 = vmul.f32 %v255_v7, %v86_v21  ;;  %v58_v36 = vld [vmem:[%s597_s2 + $0x48] sm:$0xff]  ;;  %v88_v40 = vsub.f32 %v287_v24, %v56_v28  ;;  %v59_v42 = vld [vmem:[%s597_s2 + $0x50] sm:$0xff]  ;;  %v61_v50 = vld [vmem:[%s597_s2 + $0x60] sm:$0xff] }
   0x9   :  { %178 = vst [vmem:[%s598_s3] sm:$0xff] %v146_v25  ;;  %v149_v38 = vsub.f32 %v20_v10, %v117_v26  ;;  %v120_v39 = vmul.f32 %v255_v7, %v87_v27  ;;  %v89_v41 = vsub.f32 %v25_v29, %v57_v30  ;;  %v90_v47 = vsub.f32 %v26_v35, %v58_v36  ;;  %v62_v56 = vld [vmem:[%s597_s2 + $0x68] sm:$0xff]  ;;  %v63_v58 = vld [vmem:[%s597_s2 + $0x70] sm:$0xff]  ;;  %v64_v0 = vld [vmem:[%s597_s2 + $0x78] sm:$0xff] }
   0xa   :  { %v150_v45 = vsub.f32 %v21_v12, %v118_v33  ;;  %v151_v46 = vsub.f32 %v22_v16, %v119_v34  ;;  %v91_v48 = vsub.f32 %v27_v37, %v59_v42  ;;  %v121_v53 = vmul.f32 %v255_v7, %v88_v40  ;;  %v65_v6 = vld [vmem:[%s597_s2 + $0x80] sm:$0xff]  ;;  %v66_v9 = vld [vmem:[%s597_s2 + $0x88] sm:$0xff]  ;;  %v67_v15 = vld [vmem:[%s597_s2 + $0x90] sm:$0xff] }
   0xb   :  { %v152_v52 = vsub.f32 %v23_v22, %v120_v39  ;;  %v122_v54 = vmul.f32 %v255_v7, %v89_v41  ;;  %v123_v59 = vmul.f32 %v255_v7, %v90_v47  ;;  %v68_v21 = vld [vmem:[%s597_s2 + $0x98] sm:$0xff]  ;;  %v69_v23 = vld [vmem:[%s597_s2 + $0xa0] sm:$0xff] }
   0xc   :  { %v124_v60 = vmul.f32 %v255_v7, %v91_v48  ;;  %v153_v2 = vsub.f32 %v287_v24, %v121_v53 }
   0xd   :  { %v154_v3 = vsub.f32 %v25_v29, %v122_v54  ;;  %v155_v10 = vsub.f32 %v26_v35, %v123_v59  ;;  %v70_v29 = vld [vmem:[%s597_s2 + $0xa8] sm:$0xff]  ;;  %v71_v35 = vld [vmem:[%s597_s2 + $0xb0] sm:$0xff] }
   0xe   :  { %v156_v11 = vsub.f32 %v27_v37, %v124_v60  ;;  %v72_v37 = vld [vmem:[%s597_s2 + $0xb8] sm:$0xff] }
  0x10   :  { %v28_v43 = vld [vmem:[%s596_s1 + $0x58] sm:$0xff] }
  0x11   :  { %179 = vst [vmem:[%s598_s3 + $0x8] sm:$0xff] %v147_v31  ;;  %180 = vst [vmem:[%s598_s3 + $0x10] sm:$0xff] %v148_v32  ;;  %v92_v55 = vsub.f32 %v28_v43, %v60_v44 }
  0x13   :  { %v125_v4 = vmul.f32 %v255_v7, %v92_v55 }
  0x15   :  { %v157_v17 = vsub.f32 %v28_v43, %v125_v4  ;;  %v73_v43 = vld [vmem:[%s597_s2 + $0xc0] sm:$0xff] }
  0x18   :  { %v29_v49 = vld [vmem:[%s596_s1 + $0x60] sm:$0xff]  ;;  %v30_v51 = vld [vmem:[%s596_s1 + $0x68] sm:$0xff] }
  0x19   :  { %181 = vst [vmem:[%s598_s3 + $0x18] sm:$0xff] %v149_v38  ;;  %v93_v61 = vsub.f32 %v29_v49, %v61_v50  ;;  %v94_v62 = vsub.f32 %v30_v51, %v62_v56 }
  0x1b   :  { %v126_v12 = vmul.f32 %v255_v7, %v93_v61  ;;  %v127_v13 = vmul.f32 %v255_v7, %v94_v62 }
  0x1d   :  { %v158_v24 = vsub.f32 %v29_v49, %v126_v12  ;;  %v159_v25 = vsub.f32 %v30_v51, %v127_v13  ;;  %v74_v49 = vld [vmem:[%s597_s2 + $0xc8] sm:$0xff]  ;;  %v75_v51 = vld [vmem:[%s597_s2 + $0xd0] sm:$0xff] }
  0x20   :  { %v31_v57 = vld [vmem:[%s596_s1 + $0x70] sm:$0xff] }
  0x21   :  { %182 = vst [vmem:[%s598_s3 + $0x20] sm:$0xff] %v150_v45  ;;  %183 = vst [vmem:[%s598_s3 + $0x28] sm:$0xff] %v151_v46  ;;  %v95_v5 = vsub.f32 %v31_v57, %v63_v58 }
  0x23   :  { %v128_v18 = vmul.f32 %v255_v7, %v95_v5 }
  0x25   :  { %v160_v31 = vsub.f32 %v31_v57, %v128_v18  ;;  %v76_v57 = vld [vmem:[%s597_s2 + $0xd8] sm:$0xff] }
  0x26   :  { %v80_v18 = vld [vmem:[%s597_s2 + $0xf8] sm:$0xff] }
  0x28   :  { %v364_v63 = vld [vmem:[%s596_s1 + $0x78] sm:$0xff]  ;;  %v372_v1 = vld [vmem:[%s596_s1 + $0x80] sm:$0xff] }
  0x29   :  { %184 = vst [vmem:[%s598_s3 + $0x30] sm:$0xff] %v152_v52  ;;  %v96_v19 = vsub.f32 %v364_v63, %v64_v0  ;;  %v97_v20 = vsub.f32 %v372_v1, %v65_v6 }
  0x2b   :  { %v129_v32 = vmul.f32 %v255_v7, %v96_v19  ;;  %v130_v33 = vmul.f32 %v255_v7, %v97_v20 }
  0x2d   :  { %v161_v45 = vsub.f32 %v364_v63, %v129_v32  ;;  %v162_v46 = vsub.f32 %v372_v1, %v130_v33  ;;  %v77_v63 = vld [vmem:[%s597_s2 + $0xe0] sm:$0xff]  ;;  %v78_v1 = vld [vmem:[%s597_s2 + $0xe8] sm:$0xff] }
  0x30   :  { %v385_v8 = vld [vmem:[%s596_s1 + $0x88] sm:$0xff]  ;;  %v395_v14 = vld [vmem:[%s596_s1 + $0x90] sm:$0xff]  ;;  %v403_v16 = vld [vmem:[%s596_s1 + $0x98] sm:$0xff] }
  0x31   :  { %185 = vst [vmem:[%s598_s3 + $0x38] sm:$0xff] %v153_v2  ;;  %186 = vst [vmem:[%s598_s3 + $0x40] sm:$0xff] %v154_v3  ;;  %v98_v26 = vsub.f32 %v385_v8, %v66_v9  ;;  %v99_v27 = vsub.f32 %v395_v14, %v67_v15  ;;  %v100_v34 = vsub.f32 %v403_v16, %v68_v21 }
  0x33   :  { %v131_v38 = vmul.f32 %v255_v7, %v98_v26  ;;  %v132_v39 = vmul.f32 %v255_v7, %v99_v27  ;;  %v133_v47 = vmul.f32 %v255_v7, %v100_v34 }
  0x35   :  { %v163_v52 = vsub.f32 %v385_v8, %v131_v38  ;;  %v164_v53 = vsub.f32 %v395_v14, %v132_v39  ;;  %v165_v59 = vsub.f32 %v403_v16, %v133_v47  ;;  %v79_v8 = vld [vmem:[%s597_s2 + $0xf0] sm:$0xff] }
  0x38   :  { %v420_v22 = vld [vmem:[%s596_s1 + $0xa0] sm:$0xff] }
  0x39   :  { %187 = vst [vmem:[%s598_s3 + $0x48] sm:$0xff] %v155_v10  ;;  %188 = vst [vmem:[%s598_s3 + $0x50] sm:$0xff] %v156_v11  ;;  %v101_v40 = vsub.f32 %v420_v22, %v69_v23 }
  0x3b   :  { %v134_v54 = vmul.f32 %v255_v7, %v101_v40 }
  0x3d   :  { %v166_v2 = vsub.f32 %v420_v22, %v134_v54 }
  0x40   :  { %v38_v28 = vld [vmem:[%s596_s1 + $0xa8] sm:$0xff]  ;;  %v442_v30 = vld [vmem:[%s596_s1 + $0xb0] sm:$0xff] }
  0x41   :  { %189 = vst [vmem:[%s598_s3 + $0x58] sm:$0xff] %v157_v17  ;;  %v102_v41 = vsub.f32 %v38_v28, %v70_v29  ;;  %v103_v48 = vsub.f32 %v442_v30, %v71_v35 }
  0x43   :  { %v135_v55 = vmul.f32 %v255_v7, %v102_v41  ;;  %v136_v60 = vmul.f32 %v255_v7, %v103_v48 }
  0x45   :  { %v167_v3 = vsub.f32 %v38_v28, %v135_v55  ;;  %v168_v9 = vsub.f32 %v442_v30, %v136_v60 }
  0x48   :  { %v456_v36 = vld [vmem:[%s596_s1 + $0xb8] sm:$0xff] }
  0x49   :  { %190 = vst [vmem:[%s598_s3 + $0x60] sm:$0xff] %v158_v24  ;;  %191 = vst [vmem:[%s598_s3 + $0x68] sm:$0xff] %v159_v25  ;;  %v104_v61 = vsub.f32 %v456_v36, %v72_v37 }
  0x4b   :  { %v137_v10 = vmul.f32 %v255_v7, %v104_v61 }
  0x4d   :  { %v169_v19 = vsub.f32 %v456_v36, %v137_v10 }
  0x50   :  { %v41_v42 = vld [vmem:[%s596_s1 + $0xc0] sm:$0xff]  ;;  %v42_v44 = vld [vmem:[%s596_s1 + $0xc8] sm:$0xff] }
  0x51   :  { %192 = vst [vmem:[%s598_s3 + $0x70] sm:$0xff] %v160_v31  ;;  %v105_v62 = vsub.f32 %v41_v42, %v73_v43  ;;  %v106_v4 = vsub.f32 %v42_v44, %v74_v49 }
  0x53   :  { %v138_v11 = vmul.f32 %v255_v7, %v105_v62  ;;  %v139_v13 = vmul.f32 %v255_v7, %v106_v4 }
  0x55   :  { %v170_v20 = vsub.f32 %v41_v42, %v138_v11  ;;  %v171_v23 = vsub.f32 %v42_v44, %v139_v13 }
  0x58   :  { %v43_v50 = vld [vmem:[%s596_s1 + $0xd0] sm:$0xff]  ;;  %v44_v56 = vld [vmem:[%s596_s1 + $0xd8] sm:$0xff]  ;;  %v45_v58 = vld [vmem:[%s596_s1 + $0xe0] sm:$0xff] }
  0x59   :  { %193 = vst [vmem:[%s598_s3 + $0x78] sm:$0xff] %v161_v45  ;;  %194 = vst [vmem:[%s598_s3 + $0x80] sm:$0xff] %v162_v46  ;;  %v107_v5 = vsub.f32 %v43_v50, %v75_v51  ;;  %v108_v12 = vsub.f32 %v44_v56, %v76_v57  ;;  %v109_v15 = vsub.f32 %v45_v58, %v77_v63 }
  0x5b   :  { %v140_v14 = vmul.f32 %v255_v7, %v107_v5  ;;  %v141_v21 = vmul.f32 %v255_v7, %v108_v12  ;;  %v142_v25 = vmul.f32 %v255_v7, %v109_v15 }
  0x5d   :  { %v172_v24 = vsub.f32 %v43_v50, %v140_v14  ;;  %v173_v27 = vsub.f32 %v44_v56, %v141_v21  ;;  %v174_v30 = vsub.f32 %v45_v58, %v142_v25 }
  0x60   :  { %v46_v0 = vld [vmem:[%s596_s1 + $0xe8] sm:$0xff] }
  0x61   :  { %195 = vst [vmem:[%s598_s3 + $0x88] sm:$0xff] %v163_v52  ;;  %196 = vst [vmem:[%s598_s3 + $0x90] sm:$0xff] %v164_v53  ;;  %v110_v16 = vsub.f32 %v46_v0, %v78_v1 }
  0x63   :  { %v143_v26 = vmul.f32 %v255_v7, %v110_v16 }
  0x65   :  { %v175_v31 = vsub.f32 %v46_v0, %v143_v26 }
  0x68   :  { %v47_v6 = vld [vmem:[%s596_s1 + $0xf0] sm:$0xff] }
  0x69   :  { %197 = vst [vmem:[%s598_s3 + $0x98] sm:$0xff] %v165_v59  ;;  %198 = vst [vmem:[%s598_s3 + $0xa0] sm:$0xff] %v166_v2  ;;  %v111_v22 = vsub.f32 %v47_v6, %v79_v8 }
  0x6a   :  { %199 = vst [vmem:[%s598_s3 + $0xa8] sm:$0xff] %v167_v3 }
  0x6b   :  { %v144_v28 = vmul.f32 %v255_v7, %v111_v22 }
  0x6d   :  { %v176_v32 = vsub.f32 %v47_v6, %v144_v28 }
  0x71   :  { %v48_v17 = vld [vmem:[%s596_s1 + $0xf8] sm:$0xff] }
  0x72   :  { %200 = vst [vmem:[%s598_s3 + $0xb0] sm:$0xff] %v168_v9  ;;  %201 = vst [vmem:[%s598_s3 + $0xb8] sm:$0xff] %v169_v19  ;;  %v112_v29 = vsub.f32 %v48_v17, %v80_v18 }
  0x73   :  { %202 = vst [vmem:[%s598_s3 + $0xc0] sm:$0xff] %v170_v20  ;;  %203 = vst [vmem:[%s598_s3 + $0xc8] sm:$0xff] %v171_v23 }
  0x74   :  { %204 = vst [vmem:[%s598_s3 + $0xd0] sm:$0xff] %v172_v24  ;;  %205 = vst [vmem:[%s598_s3 + $0xd8] sm:$0xff] %v173_v27  ;;  %v145_v33 = vmul.f32 %v255_v7, %v112_v29 }
  0x75   :  { %206 = vst [vmem:[%s598_s3 + $0xe0] sm:$0xff] %v174_v30  ;;  %207 = vst [vmem:[%s598_s3 + $0xe8] sm:$0xff] %v175_v31 }
  0x76   :  { %208 = vst [vmem:[%s598_s3 + $0xf0] sm:$0xff] %v176_v32  ;;  %v177_v34 = vsub.f32 %v48_v17, %v145_v33 }
  0x78   :  { %209 = vst [vmem:[%s598_s3 + $0xf8] sm:$0xff] %v177_v34 }

</bundles_post_ra>
